<compile_context>
chip_gen: v6e
topology: v6e:2x2x1
jax: 0.10.0
libtpu: 0.0.40
codegen_flags: <defaults>
</compile_context>

<pallas_src>
import functools

import jax
import jax.numpy as jnp
from jax.experimental import pallas as pl
from jax.experimental.pallas import tpu as pltpu


def _round_up(v, m):
    return (v + m - 1) // m * m


_VMEM_BUDGET = 24 * 1024 * 1024   # per-call tile budget (safe under v7x 64 MiB)
_VMEM_LIMIT = 48 * 1024 * 1024    # explicit scoped-VMEM limit passed to Mosaic


# -----------------------------------------------------------------------------
# Fused matmul kernels: out = relu?(x @ w * scale + bias (+ residual))
# -----------------------------------------------------------------------------
def _mm_kernel_single_k(use_relu: bool, use_res: bool):
    """Whole K reduction in one dot; epilogue fused; no scratch / no pl.when."""
    def kernel(*refs):
        if use_res:
            x_ref, w_ref, s_ref, b_ref, r_ref, o_ref = refs
        else:
            x_ref, w_ref, s_ref, b_ref, o_ref = refs
            r_ref = None
        y = jnp.dot(x_ref[...], w_ref[...], preferred_element_type=jnp.float32)
        # Epilogue stays in float32 (v5e VPU has no bf16); only the final store
        # is cast to the output dtype.
        y = y * s_ref[...] + b_ref[...]
        if use_res:
            y = y + r_ref[...].astype(jnp.float32)
        if use_relu:
            y = jnp.maximum(y, 0.0)
        o_ref[...] = y.astype(o_ref.dtype)
    return kernel


def _mm_kernel_multi_k(use_relu: bool, use_res: bool):
    """Fallback for shapes whose single-K tiling would not fit VMEM."""
    def kernel(*refs):
        if use_res:
            x_ref, w_ref, s_ref, b_ref, r_ref, o_ref, acc_ref = refs
        else:
            x_ref, w_ref, s_ref, b_ref, o_ref, acc_ref = refs
            r_ref = None
        k = pl.program_id(2)

        @pl.when(k == 0)
        def _():
            acc_ref[...] = jnp.zeros_like(acc_ref)

        acc_ref[...] += jnp.dot(
            x_ref[...], w_ref[...], preferred_element_type=jnp.float32
        )

        @pl.when(k == pl.num_programs(2) - 1)
        def _():
            y = acc_ref[...] * s_ref[...] + b_ref[...]
            if use_res:
                y = y + r_ref[...].astype(jnp.float32)
            if use_relu:
                y = jnp.maximum(y, 0.0)
            o_ref[...] = y.astype(o_ref.dtype)
    return kernel


def _vmem_estimate(tm, tk, tn, has_res):
    b = 2 * tm * tk * 2          # x tile (bf16, double-buffered)
    b += 2 * tk * tn * 2         # w tile (bf16, double-buffered)
    b += 2 * tm * tn * 2         # out tile (bf16, double-buffered)
    b += tm * tn * 4             # f32 accumulator scratch (fallback path)
    b += 4 * tn * 4              # scale + bias
    if has_res:
        # TODO(synk): residual only changes per (i,j); pl.Buffered(1) would halve this.
        b += 2 * tm * tn * 2
    return b


def _select_tiles(M, K, N, has_res):
    Np = _round_up(N, 128)       # lane-dense output columns
    Mp0 = _round_up(M, 8)
    tm = min(1024, Mp0)
    tn = Np                      # full-width N -> weight slab resident in VMEM
    # v7x has 2 TensorCores: make sure the "parallel" grid has >= 2 blocks.
    if (Mp0 + tm - 1) // tm == 1:
        if Np >= 256 and Np % 256 == 0:
            tn = Np // 2
        elif Mp0 >= 256:
            tm = _round_up((Mp0 + 1) // 2, 8)
    tk = K                       # single K step (block == full K extent)
    multi_k = False
    while _vmem_estimate(tm, tk, tn, has_res) > _VMEM_BUDGET and tm > 256:
        tm = max(256, _round_up(tm // 2, 8))
    if _vmem_estimate(tm, tk, tn, has_res) > _VMEM_BUDGET:
        # K-tiled fallback ("arbitrary" axis + f32 accumulator).
        multi_k = True
        Kp = _round_up(K, 128)
        tk = 128
        for cand in (1024, 512, 256):
            if Kp % cand == 0 and _vmem_estimate(tm, cand, tn, has_res) <= _VMEM_BUDGET:
                tk = cand
                break
        while (_vmem_estimate(tm, tk, tn, has_res) > _VMEM_BUDGET
               and tn >= 256 and tn % 256 == 0):
            tn //= 2
    else:
        Kp = K
    Mp = _round_up(Mp0, tm)
    return tm, tk, tn, Mp, Kp, Np, multi_k


def fused_matmul(x, w, scale, bias, residual=None, *, relu=False,
                 out_dtype=jnp.bfloat16):
    """x:(M,K) @ w:(K,N) with fused BN scale/bias, optional residual + ReLU."""
    M, K = x.shape
    _, N = w.shape
    has_res = residual is not None
    tm, tk, tn, Mp, Kp, Np, multi_k = _select_tiles(M, K, N, has_res)

    # bf16 operands for the MXU; accumulation stays f32 inside the kernel.
    x = x.astype(jnp.bfloat16)
    w = w.astype(jnp.bfloat16)
    if (Mp, Kp) != (M, K):
        x = jnp.pad(x, ((0, Mp - M), (0, Kp - K)))
    if (Kp, Np) != (K, N):
        w = jnp.pad(w, ((0, Kp - K), (0, Np - N)))

    scale = scale.reshape(1, N).astype(jnp.float32)
    bias = bias.reshape(1, N).astype(jnp.float32)
    if Np != N:
        scale = jnp.pad(scale, ((0, 0), (0, Np - N)))
        bias = jnp.pad(bias, ((0, 0), (0, Np - N)))

    num_m, num_n, num_k = Mp // tm, Np // tn, Kp // tk
    args = [x, w, scale, bias]

    if multi_k:
        in_specs = [
            pl.BlockSpec((tm, tk), lambda i, j, k: (i, k)),
            pl.BlockSpec((tk, tn), lambda i, j, k: (k, j)),
            pl.BlockSpec((1, tn), lambda i, j, k: (0, j)),
            pl.BlockSpec((1, tn), lambda i, j, k: (0, j)),
        ]
        res_spec = pl.BlockSpec((tm, tn), lambda i, j, k: (i, j))
        out_spec = pl.BlockSpec((tm, tn), lambda i, j, k: (i, j))
        grid = (num_m, num_n, num_k)
        scratch = [pltpu.VMEM((tm, tn), jnp.float32)]
        semantics = ("parallel", "parallel", "arbitrary")
        kernel = _mm_kernel_multi_k(relu, has_res)
    else:
        in_specs = [
            pl.BlockSpec((tm, tk), lambda i, j: (i, 0)),
            pl.BlockSpec((tk, tn), lambda i, j: (0, j)),   # w: resident across i
            pl.BlockSpec((1, tn), lambda i, j: (0, j)),
            pl.BlockSpec((1, tn), lambda i, j: (0, j)),
        ]
        res_spec = pl.BlockSpec((tm, tn), lambda i, j: (i, j))
        out_spec = pl.BlockSpec((tm, tn), lambda i, j: (i, j))
        grid = (num_m, num_n)
        scratch = []
        semantics = ("parallel", "parallel")
        kernel = _mm_kernel_single_k(relu, has_res)

    if has_res:
        r = residual.astype(jnp.bfloat16)
        if r.shape != (Mp, Np):
            r = jnp.pad(r, ((0, Mp - M), (0, Np - N)))
        in_specs.append(res_spec)
        args.append(r)

    out = pl.pallas_call(
        kernel,
        out_shape=jax.ShapeDtypeStruct((Mp, Np), out_dtype),
        grid_spec=pltpu.PrefetchScalarGridSpec(
            num_scalar_prefetch=0,
            grid=grid,
            in_specs=in_specs,
            out_specs=out_spec,
            scratch_shapes=scratch,
        ),
        compiler_params=pltpu.CompilerParams(
            dimension_semantics=semantics,
            vmem_limit_bytes=_VMEM_LIMIT,
        ),
    )(*args)

    if (Mp, Np) != (M, N):
        out = out[:M, :N]
    return out


# -----------------------------------------------------------------------------
# MaxPool2d(kernel=3, stride=2, padding=1) on NHWC input.
# Stride-2 even/odd decomposition is done in XLA glue; the Pallas kernel only
# does unit-stride value slices + max (no strided ref indexing).
# -----------------------------------------------------------------------------
def _maxpool_kernel(ee_ref, eo_ref, oe_ref, oo_ref, o_ref):
    Ho, Wo = o_ref.shape[1], o_ref.shape[2]
    ee = ee_ref[...]   # ee[r, w] = xp[2r,   2w  ]
    eo = eo_ref[...]   # eo[r, w] = xp[2r,   2w+1]
    oe = oe_ref[...]   # oe[r, w] = xp[2r+1, 2w  ]
    oo = oo_ref[...]   # oo[r, w] = xp[2r+1, 2w+1]
    m = ee[:, :Ho, :Wo, :]
    m = jnp.maximum(m, eo[:, :Ho, :Wo, :])
    m = jnp.maximum(m, ee[:, :Ho, 1:Wo + 1, :])
    m = jnp.maximum(m, oe[:, :Ho, :Wo, :])
    m = jnp.maximum(m, oo[:, :Ho, :Wo, :])
    m = jnp.maximum(m, oe[:, :Ho, 1:Wo + 1, :])
    m = jnp.maximum(m, ee[:, 1:Ho + 1, :Wo, :])
    m = jnp.maximum(m, eo[:, 1:Ho + 1, :Wo, :])
    m = jnp.maximum(m, ee[:, 1:Ho + 1, 1:Wo + 1, :])
    o_ref[...] = m.astype(o_ref.dtype)


@jax.jit
def maxpool_3x3_s2_p1(x):
    """PyTorch MaxPool2d(kernel=3, stride=2, padding=1) on NHWC input."""
    N, H, W, C = x.shape
    Ho = (H - 1) // 2 + 1
    Wo = (W - 1) // 2 + 1
    neg = jnp.asarray(-jnp.inf, x.dtype)
    xp = jnp.pad(x, ((0, 0), (1, 1), (1, 1), (0, 0)), constant_values=neg)
    # even/odd row x column views (each ~1/4 of the padded input).
    ee = xp[:, 0::2, 0::2, :]
    eo = xp[:, 0::2, 1::2, :]
    oe = xp[:, 1::2, 0::2, :]
    oo = xp[:, 1::2, 1::2, :]

    def spec(a):
        blk = (1,) + a.shape[1:]
        return pl.BlockSpec(blk, lambda n: (n, 0, 0, 0))

    # TODO(synk): output last dim C=64 (<128 lanes) still produces masked stores;
    #             folding W pairs into the lane dim is a possible follow-up.
    return pl.pallas_call(
        _maxpool_kernel,
        out_shape=jax.ShapeDtypeStruct((N, Ho, Wo, C), x.dtype),
        grid_spec=pltpu.PrefetchScalarGridSpec(
            num_scalar_prefetch=0,
            grid=(N,),
            in_specs=[spec(ee), spec(eo), spec(oe), spec(oo)],
            out_specs=pl.BlockSpec((1, Ho, Wo, C), lambda n: (n, 0, 0, 0)),
        ),
        compiler_params=pltpu.CompilerParams(
            dimension_semantics=("parallel",),
        ),
    )(ee, eo, oe, oo)


# -----------------------------------------------------------------------------
# Global average pool (AdaptiveAvgPool2d(1) + flatten): NHWC -> (N, C) float32
# Single gridless kernel: one DMA + one reduction (layer4 activations are tiny).
# -----------------------------------------------------------------------------
def _avgpool_kernel(x_ref, o_ref):
    x = x_ref[...].astype(jnp.float32)
    o_ref[...] = jnp.mean(x, axis=(1, 2))


@jax.jit
def global_avgpool(x):
    N, H, W, C = x.shape
    return pl.pallas_call(
        _avgpool_kernel,
        out_shape=jax.ShapeDtypeStruct((N, C), jnp.float32),
    )(x)


# -----------------------------------------------------------------------------
# Plain-JAX glue: im2col, conv+bn wrapper, ResNet-101 structure, params
# -----------------------------------------------------------------------------
def _im2col(x, k, stride, pad):
    N, H, W, C = x.shape
    if k == 1 and stride == 1 and pad == 0:
        return x.reshape(N * H * W, C), (N, H, W)
    if pad:
        x = jnp.pad(x, ((0, 0), (pad, pad), (pad, pad), (0, 0)))
    Hp, Wp = x.shape[1], x.shape[2]
    Ho = (Hp - k) // stride + 1
    Wo = (Wp - k) // stride + 1
    cols = [
        x[:, i:i + stride * Ho:stride, j:j + stride * Wo:stride, :]
        for i in range(k)
        for j in range(k)
    ]
    pat = jnp.stack(cols, axis=3)  # (N, Ho, Wo, k*k, C)
    return pat.reshape(N * Ho * Wo, k * k * C), (N, Ho, Wo)


@functools.partial(jax.jit, static_argnames=("k", "stride", "pad", "relu"))
def conv_bn(x, p, residual=None, *, k, stride, pad, relu):
    # im2col gather, K/M padding and the pallas_call trace within one jit so
    # XLA fuses the pad into the patch materialization (no extra HBM pass).
    pat, (N, Ho, Wo) = _im2col(x, k, stride, pad)
    res = None
    if residual is not None:
        res = residual.reshape(N * Ho * Wo, residual.shape[-1])
    out = fused_matmul(pat, p["w"], p["scale"], p["bias"], res, relu=relu)
    return out.reshape(N, Ho, Wo, -1)


def bottleneck(x, bp, stride):
    out = conv_bn(x, bp["conv1"], k=1, stride=1, pad=0, relu=True)
    out = conv_bn(out, bp["conv2"], k=3, stride=stride, pad=1, relu=True)
    if "down" in bp:
        identity = conv_bn(x, bp["down"], k=1, stride=stride, pad=0, relu=False)
    else:
        identity = x
    # conv3 -> bn3, then += identity, then ReLU (fused into the matmul epilogue)
    return conv_bn(out, bp["conv3"], identity, k=1, stride=1, pad=0, relu=True)


@jax.jit
def fc_head(feat, p):
    return fused_matmul(feat, p["w"], p["scale"], p["bias"],
                        relu=False, out_dtype=jnp.float32)


RESNET101_CFG = ((64, 3, 1), (128, 4, 2), (256, 23, 2), (512, 3, 2))
EXPANSION = 4


def _make_conv_bn_params(key, cin, cout, k):
    kw, kg, kb = jax.random.split(key, 3)
    fan_in = cin * k * k
    w = jax.random.normal(kw, (k, k, cin, cout), jnp.float32) * (2.0 / fan_in) ** 0.5
    gamma = 1.0 + 0.1 * jax.random.normal(kg, (cout,), jnp.float32)
    beta = 0.05 * jax.random.normal(kb, (cout,), jnp.float32)
    # fold eval-mode BN (running_mean=0, running_var=1, eps=1e-5) into scale/bias
    scale = gamma / jnp.sqrt(1.0 + 1e-5)
    bias = beta
    return {
        "w": w.reshape(k * k * cin, cout).astype(jnp.bfloat16),
        "scale": scale,
        "bias": bias,
    }


def make_params(key, output_dim):
    keys = iter(jax.random.split(key, 256))
    params = {"stem": _make_conv_bn_params(next(keys), 3, 64, 7), "layers": []}
    inplanes = 64
    for planes, nblocks, _stride in RESNET101_CFG:
        blocks = []
        for bi in range(nblocks):
            bp = {
                "conv1": _make_conv_bn_params(next(keys), inplanes, planes, 1),
                "conv2": _make_conv_bn_params(next(keys), planes, planes, 3),
                "conv3": _make_conv_bn_params(next(keys), planes, planes * EXPANSION, 1),
            }
            if bi == 0:
                bp["down"] = _make_conv_bn_params(
                    next(keys), inplanes, planes * EXPANSION, 1
                )
            blocks.append(bp)
            inplanes = planes * EXPANSION
        params["layers"].append(blocks)
    wfc = jax.random.normal(next(keys), (2048, output_dim), jnp.float32) * (
        1.0 / 2048.0
    ) ** 0.5
    params["fc"] = {
        "w": wfc.astype(jnp.bfloat16),
        "scale": jnp.ones((output_dim,), jnp.float32),
        "bias": jnp.zeros((output_dim,), jnp.float32),  # init_weights: Linear bias = 0
    }
    return params


def simple_densenet_forward(params, x_nchw):
    """forward(x) of SimpleDenseNet == resnet101(x) with fc -> Linear(2048, out)."""
    x = jnp.transpose(x_nchw, (0, 2, 3, 1)).astype(jnp.bfloat16)  # NCHW -> NHWC
    x = conv_bn(x, params["stem"], k=7, stride=2, pad=3, relu=True)  # conv1+bn1+relu
    x = maxpool_3x3_s2_p1(x)
    for layer_params, (_, _, stride) in zip(params["layers"], RESNET101_CFG):
        for bi, bp in enumerate(layer_params):
            x = bottleneck(x, bp, stride if bi == 0 else 1)
    feat = global_avgpool(x)  # (N, 2048) float32
    logits = fc_head(feat, params["fc"])
    return logits


if __name__ == "__main__":
    key = jax.random.PRNGKey(0)
    kp, kx = jax.random.split(key)
    output_dim = 10
    params = make_params(kp, output_dim)
    # ResNet-101 stem requires 3 input channels; small 32x32 spatial keeps all
    # stages valid (feature map reaches 1x1 at layer4).
    x = jax.random.normal(kx, (2, 3, 32, 32), jnp.float32)  # NCHW like PyTorch
    out = simple_densenet_forward(params, x)
    out = jax.block_until_ready(out)
    assert out.shape == (2, output_dim), out.shape
    assert bool(jnp.all(jnp.isfinite(out)))
    print("KERNEL_OK")
</pallas_src>

<mosaic_0001>
module attributes {stable_mosaic.version = 11 : i64} {
  func.func @kernel(%arg0: i32, %arg1: i32, %arg2: memref<256x147xbf16, #tpu.memory_space<vmem>>, %arg3: memref<147x128xbf16, #tpu.memory_space<vmem>>, %arg4: memref<1x128xf32, #tpu.memory_space<vmem>>, %arg5: memref<1x128xf32, #tpu.memory_space<vmem>>, %arg6: memref<256x128xbf16, #tpu.memory_space<vmem>>) attributes {dimension_semantics = [#tpu.dimension_semantics<parallel>, #tpu.dimension_semantics<parallel>], iteration_bounds = array<i64: 2, 1>, scalar_prefetch = 0 : i64, scratch_operands = 0 : i64, tpu.core_type = #tpu.core_type<tc>, window_params = [{transform_indices = @transform_0, window_bounds = array<i64: 256, 147>}, {transform_indices = @transform_1, window_bounds = array<i64: 147, 128>}, {transform_indices = @transform_2, window_bounds = array<i64: 1, 128>}, {transform_indices = @transform_3, window_bounds = array<i64: 1, 128>}, {transform_indices = @transform_4, window_bounds = array<i64: 256, 128>}]} {
    %c0 = arith.constant 0 : index
    %c0_0 = arith.constant 0 : index
    %0 = vector.load %arg2[%c0, %c0_0] : memref<256x147xbf16, #tpu.memory_space<vmem>>, vector<256x147xbf16>
    %c0_1 = arith.constant 0 : index
    %c0_2 = arith.constant 0 : index
    %1 = vector.load %arg3[%c0_1, %c0_2] : memref<147x128xbf16, #tpu.memory_space<vmem>>, vector<147x128xbf16>
    %cst = arith.constant dense<0.000000e+00> : vector<256x128xf32>
    %2 = tpu.matmul %0, %1, %cst {dimension_numbers = #tpu.dot_dimension_numbers<[1], [0], [0], [1], [0, 0, 1, 1], [], []>} : vector<256x147xbf16>, vector<147x128xbf16>, vector<256x128xf32> -> vector<256x128xf32>
    %c0_3 = arith.constant 0 : index
    %c0_4 = arith.constant 0 : index
    %3 = vector.load %arg4[%c0_3, %c0_4] : memref<1x128xf32, #tpu.memory_space<vmem>>, vector<1x128xf32>
    %4 = vector.broadcast %3 : vector<1x128xf32> to vector<256x128xf32>
    %5 = arith.mulf %2, %4 : vector<256x128xf32>
    %c0_5 = arith.constant 0 : index
    %c0_6 = arith.constant 0 : index
    %6 = vector.load %arg5[%c0_5, %c0_6] : memref<1x128xf32, #tpu.memory_space<vmem>>, vector<1x128xf32>
    %7 = vector.broadcast %6 : vector<1x128xf32> to vector<256x128xf32>
    %8 = arith.addf %5, %7 : vector<256x128xf32>
    %cst_7 = arith.constant 0.000000e+00 : f32
    %9 = vector.broadcast %cst_7 : f32 to vector<256x128xf32>
    %10 = arith.maximumf %8, %9 : vector<256x128xf32>
    %11 = arith.truncf %10 : vector<256x128xf32> to vector<256x128xbf16>
    %c0_8 = arith.constant 0 : index
    %c0_9 = arith.constant 0 : index
    %12 = vector.load %arg6[%c0_8, %c0_9] : memref<256x128xbf16, #tpu.memory_space<vmem>>, vector<256x128xbf16>
    tpu.vector_store %arg6[%c0_8, %c0_9], %11 {strides = array<i32>} : memref<256x128xbf16, #tpu.memory_space<vmem>>, vector<256x128xbf16>,
    return
  }
  func.func @transform_0(%arg0: i32, %arg1: i32) -> (i32, i32) {
    %c0_i32 = arith.constant 0 : i32
    %c0_i32_0 = arith.constant 0 : i32
    return %arg0, %c0_i32 : i32, i32
  }
  func.func @transform_1(%arg0: i32, %arg1: i32) -> (i32, i32) {
    %c0_i32 = arith.constant 0 : i32
    %c0_i32_0 = arith.constant 0 : i32
    return %c0_i32, %arg1 : i32, i32
  }
  func.func @transform_2(%arg0: i32, %arg1: i32) -> (i32, i32) {
    %c0_i32 = arith.constant 0 : i32
    %c0_i32_0 = arith.constant 0 : i32
    return %c0_i32, %arg1 : i32, i32
  }
  func.func @transform_3(%arg0: i32, %arg1: i32) -> (i32, i32) {
    %c0_i32 = arith.constant 0 : i32
    %c0_i32_0 = arith.constant 0 : i32
    return %c0_i32, %arg1 : i32, i32
  }
  func.func @transform_4(%arg0: i32, %arg1: i32) -> (i32, i32) {
    %c0_i32 = arith.constant 0 : i32
    return %arg0, %arg1 : i32, i32
  }
}

</mosaic_0001>

<bundles_post_ra>
// kernel: conv_bn.1
= control target key start
LH: loop header
LB: loop body
LE: loop exit
PB: predicated region body
PF: predicated region fallthrough
CT: control target
= control target key end

     0   :  { %9 = vsyncpa [#allocation3], 0  ;;  %s1900_s0 = inlined_call_operand.vmem [shape: bf16[512,147], index: 0, kind: input, shape index: {}]   ;;  %s1901_s1 = inlined_call_operand.vmem [shape: bf16[147,128], index: 1, kind: input, shape index: {}]   ;;  %s1902_s2 = inlined_call_operand.vmem [shape: f32[1,128], index: 2, kind: input, shape index: {}]   ;;  %s1903_s3 = inlined_call_operand.vmem [shape: f32[1,128], index: 3, kind: input, shape index: {}]   ;;  %s1904_s4 = inlined_call_operand.hbm [shape: bf16[512,128], index: 4, kind: output, shape index: {}]  }
   0x1   :  { %11 = vsyncpa [#allocation3 + $0x1], 0  ;;  %s1610_s15 = smov 0   ;;  %s1612_s16 = smov 0  }
   0x2   :  { %s1614_s17 = smov 0   ;;  %s1616_s18 = smov 0  }
   0x3   :  { %s1618_s19 = smov 0   ;;  %s1620_s20 = smov 0  }
   0x4 LB: > { %s1127_s21 = sadd.s32 4294967295, %s1578_s20   ;;  %s1128_s22 = sadd.s32 4294967294, %s1578_s20   ;;  %s1578_s20 = sphi %s1620_s20, %s17_s20   ;;  %s1574_s19 = sphi %s1618_s19, %s1911_s19   ;;  %s1570_s18 = sphi %s1616_s18, %s1910_s18   ;;  %s1566_s17 = sphi %s1614_s17, %s1909_s17   ;;  %s1562_s16 = sphi %s1612_s16, %s1908_s16   ;;  %s1558_s15 = sphi %s1610_s15, %s1907_s15  }
   0x5   : > { %s29_s23 = sadd.s32 1, %s1574_s19  ;;  %s142_s24 = sadd.s32 1, %s1566_s17 }
   0x6   : > { %p31_p0 = scmp.ge.s32.totalorder %s29_s23, 2  ;;  %p152_p1 = scmp.ne.s32.totalorder %s1566_s17, %s1562_s16 }
   0x7   : > { %p153_p2 = scmp.eq.s32.totalorder %s1127_s21, 1  ;;  %p158_p3 = scmp.ne.s32.totalorder %s1562_s16, %s1558_s15 }
   0x8   : > { %s1913_s23 = smov (%p31_p0, %s29_s23), 0  ;;  %p159_p5 = scmp.eq.s32.totalorder %s1128_s22, 1 }
   0x9   : > { %p1650_p4 = por %p153_p2, %p152_p1  ;;  %s137_s26 = ssub.s32 %s1574_s19, %s1913_s23 }
   0xa   : > { %p1134_p6 = scmp.ge.s32.totalorder %s1578_s20, 1  ;;  %p140_p7 = scmp.eq.s32.totalorder %s137_s26, 0 }
   0xb   : > { %p1657_p8 = por %p159_p5, %p158_p3  ;;  %p206_p9 = scmp.lt.s32.totalorder %s1578_s20, 3 }
   0xc   : > { %s1663_s28 = scalar_select %p140_p7, %s1566_s17, %s142_s24  }
   0xd   : > { %p207_p10 = pnand %p1134_p6, %p206_p9 }
   0xe   : > { %s1136_s9 = sshll.u32 (!%p207_p10), %s1570_s18, 5  ;;  %s1269_s29 = sshll.u32 (!%p207_p10), %s1570_s18, 11 }
   0xf   : > { %210 = sbr.rel (%p207_p10) target bundleno = 336 (0x150), region = 36  ;;  %p244_p11 = scmp.lt.s32.totalorder (!%p207_p10), %s1136_s9, 63 }
  0x10   : > { %s1847_s7 = scalar_lea.hbm (!%p207_p10), %s1904_s4, %s1269_s29 }
  0x14   : > { %v1444_v0 = vld [vmem:[%s1901_s1 + $0x38] sm:$0xff]   ;;  %v1580_v1 = vmov 0   ;;  %v1445_v2 = vld [vmem:[%s1901_s1 + $0x30] sm:$0xff]   ;;  %v1446_v3 = vld [vmem:[%s1901_s1 + $0x28] sm:$0xff]   ;;  %s1915_s9 = smov (!%p244_p11, %s1136_s9), 63  ;;  %vm514_vm0 = vcmask 154624  }
  0x15   : > { %570 = vmatprep.subr.bf16.mxu0 %v1580_v1  ;;  %1365 = vmatprep.subr.bf16.mxu1 %v1580_v1  ;;  %v1447_v4 = vld [vmem:[%s1901_s1 + $0x20] sm:$0xff]   ;;  %s1236_s12 = sshll.u32 %s1915_s9, 3  ;;  %v1448_v5 = vld [vmem:[%s1901_s1 + $0x18] sm:$0xff]   ;;  %v1449_v8 = vld [vmem:[%s1901_s1 + $0x10] sm:$0xff]   ;;  %vm563_vm1 = vcmask 1040384   ;;  %vm564_vm2 = vcmask 1041408  }
  0x16   : > { %571 = vmatpush1.bf16.msra.mxu0 %v1444_v0  ;;  %1375 = vmatpush1.bf16.msra.mxu1 %v1444_v0  ;;  %s1681_s21 = scalar_lea.vmem %s1900_s0, %s1236_s12  ;;  %v1450_v9 = vld [vmem:[%s1901_s1 + $0x8] sm:$0xff]   ;;  %v1581_v10 = vmov 65535   ;;  %v1451_v12 = vld [vmem:[%s1901_s1] sm:$0xff]   ;;  %s1582_s9 = smov [#allocation2]  }
  0x17   : > { %572 = vmatprep.subr.bf16.mxu0 %v1580_v1  ;;  %1366 = vmatprep.subr.bf16.mxu1 %v1580_v1  ;;  %v1456_v6 = vld [vmem:[%s1681_s21 + $0x4] ss:$8 sps:$4 sm:$0xff]   ;;  %v565_v11 = vsel %vm563_vm1, 4294967295, %v1581_v10  ;;  %v1452_v13 = vld [vmem:[%s1901_s1 + $0x48] ss:$0 sps:$4 sm:$0x33]  }
  0x18   : > { %v1459_v7 = vld [vmem:[%s1681_s21 + $0x84] ss:$8 sps:$4 sm:$0xff]   ;;  %1181 = vmatprep.mubr.msk.bf16.mxu0 %vm514_vm0, %v1456_v6  ;;  %v566_v14 = vsel %vm564_vm2, %v565_v11, 0  ;;  %v1454_v17 = vld [vmem:[%s1681_s21] ss:$8 sps:$4 sm:$0xff]   ;;  %s1506_s10 = sshll.u32 %s1582_s9, 4  ;;  %s1507_s10 = int_to_ptr.vmem [resolvable:$false] %s1506_s10 }
  0x19   : > { %1189 = vmatprep.mubr.msk.bf16.mxu1 %vm514_vm0, %v1459_v7  ;;  %v568_v15 = vand.u32 %v1452_v13, %v566_v14  ;;  %v1453_v16 = vld [vmem:[%s1901_s1 + $0x40] sm:$0xff]   ;;  %v1460_v19 = vld [vmem:[%s1681_s21 + $0x14] ss:$8 sps:$4 sm:$0xff]   ;;  %v1464_v21 = vld [vmem:[%s1681_s21 + $0x10] ss:$8 sps:$4 sm:$0xff]   ;;  %s1508_s11 = scalar_lea.vmem %s1507_s10, 4096 }
  0x1a   : > { %573 = vmatpush1.bf16.msra.mxu0 %v1445_v2  ;;  %1376 = vmatpush1.bf16.msra.mxu1 %v1445_v2  ;;  %v1457_v18 = vld [vmem:[%s1681_s21 + $0x80] ss:$8 sps:$4 sm:$0xff]   ;;  %v1462_v20 = vld [vmem:[%s1681_s21 + $0x94] ss:$8 sps:$4 sm:$0xff]   ;;  %v1465_v22 = vld [vmem:[%s1681_s21 + $0x90] ss:$8 sps:$4 sm:$0xff]  }
  0x1b   : > { %574 = vmatprep.subr.bf16.mxu0 %v1580_v1  ;;  %1367 = vmatprep.subr.bf16.mxu1 %v1580_v1  ;;  %v1466_v23 = vld [vmem:[%s1681_s21 + $0x24] ss:$8 sps:$4 sm:$0xff]   ;;  %v1470_v25 = vld [vmem:[%s1681_s21 + $0x20] ss:$8 sps:$4 sm:$0xff]   ;;  %v1472_v27 = vld [vmem:[%s1681_s21 + $0x34] ss:$8 sps:$4 sm:$0xff]  }
  0x1c   : > { %v1468_v24 = vld [vmem:[%s1681_s21 + $0xa4] ss:$8 sps:$4 sm:$0xff]   ;;  %v1471_v26 = vld [vmem:[%s1681_s21 + $0xa0] ss:$8 sps:$4 sm:$0xff]   ;;  %v1474_v28 = vld [vmem:[%s1681_s21 + $0xb4] ss:$8 sps:$4 sm:$0xff]  }
  0x1d   : > { %v1476_v29 = vld [vmem:[%s1681_s21 + $0x30] ss:$8 sps:$4 sm:$0xff]   ;;  %v1478_v31 = vld [vmem:[%s1681_s21 + $0x44] ss:$8 sps:$4 sm:$0xff]   ;;  %v1482_v33 = vld [vmem:[%s1681_s21 + $0x40] ss:$8 sps:$4 sm:$0xff]  }
  0x1e   : > { %575 = vmatpush1.bf16.msra.mxu0 %v1446_v3  ;;  %1377 = vmatpush1.bf16.msra.mxu1 %v1446_v3  ;;  %v1477_v30 = vld [vmem:[%s1681_s21 + $0xb0] ss:$8 sps:$4 sm:$0xff]   ;;  %v1480_v32 = vld [vmem:[%s1681_s21 + $0xc4] ss:$8 sps:$4 sm:$0xff]   ;;  %v1483_v34 = vld [vmem:[%s1681_s21 + $0xc0] ss:$8 sps:$4 sm:$0xff]  }
  0x1f   : > { %576 = vmatprep.subr.bf16.mxu0 %v1580_v1  ;;  %1368 = vmatprep.subr.bf16.mxu1 %v1580_v1  ;;  %v1484_v35 = vld [vmem:[%s1681_s21 + $0x54] ss:$8 sps:$4 sm:$0xff]   ;;  %v1488_v37 = vld [vmem:[%s1681_s21 + $0x50] ss:$8 sps:$4 sm:$0xff]   ;;  %v1490_v39 = vld [vmem:[%s1681_s21 + $0x64] ss:$8 sps:$4 sm:$0xff]  }
  0x20   : > { %v1486_v36 = vld [vmem:[%s1681_s21 + $0xd4] ss:$8 sps:$4 sm:$0xff]   ;;  %v1489_v38 = vld [vmem:[%s1681_s21 + $0xd0] ss:$8 sps:$4 sm:$0xff]   ;;  %v1492_v40 = vld [vmem:[%s1681_s21 + $0xe4] ss:$8 sps:$4 sm:$0xff]  }
  0x21   : > { %v1494_v41 = vld [vmem:[%s1681_s21 + $0x60] ss:$8 sps:$4 sm:$0xff]   ;;  %v1496_v43 = vld [vmem:[%s1681_s21 + $0x74] ss:$8 sps:$4 sm:$0xff]   ;;  %v1500_v45 = vld [vmem:[%s1681_s21 + $0x70] ss:$8 sps:$4 sm:$0xff]  }
  0x22   : > { %577 = vmatpush1.bf16.msra.mxu0 %v1447_v4  ;;  %1378 = vmatpush1.bf16.msra.mxu1 %v1447_v4  ;;  %v1495_v42 = vld [vmem:[%s1681_s21 + $0xe0] ss:$8 sps:$4 sm:$0xff]   ;;  %v1498_v44 = vld [vmem:[%s1681_s21 + $0xf4] ss:$8 sps:$4 sm:$0xff]   ;;  %v1501_v46 = vld [vmem:[%s1681_s21 + $0xf0] ss:$8 sps:$4 sm:$0xff]  }
  0x23   : > { %578 = vmatprep.subr.bf16.mxu0 %v1580_v1  ;;  %1369 = vmatprep.subr.bf16.mxu1 %v1580_v1  ;;  %v1752_v47 = vld [vmem:[%s1902_s2] ss:$0 sm:$0xff]  ;;  %s240_s21 = sand.u32 1, %s1562_s16  }
  0x24   : > { %v1758_v51 = vld [vmem:[%s1903_s3] ss:$0 sm:$0xff]  ;;  %s1135_s24 = sshll.u32 %s240_s21, 7  ;;  %s1855_s18 = scalar_lea.sflag [#allocation3], %s240_s21 }
  0x25   : > { %s1774_s26 = scalar_lea.vmem [#allocation2], %s1135_s24 }
  0x26   : > { %579 = vmatpush1.bf16.msra.mxu0 %v1448_v5  ;;  %1379 = vmatpush1.bf16.msra.mxu1 %v1448_v5  ;;  %s1016_s30 = sshll.u32 %s1774_s26, 4  ;;  %s1849_s30 = int_to_ptr.vmem [resolvable:$true] %s1016_s30 }
  0x27   : > { %580 = vmatprep.subr.bf16.mxu0 %v1580_v1  ;;  %1370 = vmatprep.subr.bf16.mxu1 %v1580_v1  ;;  %s1502_s8 = scalar_lea.vmem %s1849_s30, 2048  ;;  %p1509_p1 = scmp.lt.s32.totalorder %s1849_s30, %s1507_s10 }
  0x28   : > { %p1503_p12 = scmp.ne.s32.totalorder %s1849_s30, %s1502_s8  ;;  %p1510_p2 = scmp.lt.s32.totalorder %s1508_s11, %s1502_s8 }
  0x2a   : > { %581 = vmatpush1.bf16.msra.mxu0 %v1449_v8  ;;  %1380 = vmatpush1.bf16.msra.mxu1 %v1449_v8  ;;  %p1504_p13 = pnand %p1503_p12, %p1650_p4  ;;  %p1511_p3 = por %p1510_p2, %p1509_p1 }
  0x2b   : > { %582 = vmatprep.subr.bf16.mxu0 %v1580_v1  ;;  %1371 = vmatprep.subr.bf16.mxu1 %v1580_v1 }
  0x2c   : > { %p1505_p0 = pneg %p1504_p13 }
  0x2e   : > { %583 = vmatpush1.bf16.msra.mxu0 %v1450_v9  ;;  %1381 = vmatpush1.bf16.msra.mxu1 %v1450_v9  ;;  %p1512_p5 = pnand %p1511_p3, %p1505_p0 }
  0x2f   : > { %584 = vmatprep.subr.bf16.mxu0 %v1580_v1  ;;  %1372 = vmatprep.subr.bf16.mxu1 %v1580_v1 }
  0x32   : > { %585 = vmatpush1.bf16.msra.mxu0 %v1451_v12  ;;  %1382 = vmatpush1.bf16.msra.mxu1 %v1451_v12 }
  0x33   : > { %598 = vmatprep.subr.bf16.mxu0 %v1580_v1  ;;  %1373 = vmatprep.subr.bf16.mxu1 %v1580_v1 }
  0x36   : > { %599 = vmatpush2.bf16.msra.mxu0 %v568_v15  ;;  %1383 = vmatpush2.bf16.msra.mxu1 %v568_v15 }
  0x37   : > { %600 = vmatprep.subr.bf16.mxu0 %v1580_v1  ;;  %1374 = vmatprep.subr.bf16.mxu1 %v1580_v1 }
  0x3a   : > { %601 = vmatpush2.bf16.msra.mxu0 %v1453_v16  ;;  %1384 = vmatpush2.bf16.msra.mxu1 %v1453_v16 }
  0x3d   : > { %603 = vmatmul.mubr.bf16.vlgmr.msra.gmra.mxu0 %v1454_v17  ;;  %667 = vmatmul.mubr.bf16.vlgmr.msra.gmra.mxu1 %v1457_v18 }
  0x3e   : > { %1182 = vmatprep.mubr.msk.bf16.mxu0 %vm514_vm0, %v1460_v19  ;;  %1190 = vmatprep.mubr.msk.bf16.mxu1 %vm514_vm0, %v1462_v20 }
  0x45   : > { %611 = vmatmul.mubr.bf16.gmra.mxu0 %v1464_v21  ;;  %675 = vmatmul.mubr.bf16.gmra.mxu1 %v1465_v22 }
  0x46   : > { %1183 = vmatprep.mubr.msk.bf16.mxu0 %vm514_vm0, %v1466_v23  ;;  %1191 = vmatprep.mubr.msk.bf16.mxu1 %vm514_vm0, %v1468_v24 }
  0x4d   : > { %619 = vmatmul.mubr.bf16.gmra.mxu0 %v1470_v25  ;;  %683 = vmatmul.mubr.bf16.gmra.mxu1 %v1471_v26 }
  0x4e   : > { %1184 = vmatprep.mubr.msk.bf16.mxu0 %vm514_vm0, %v1472_v27  ;;  %1192 = vmatprep.mubr.msk.bf16.mxu1 %vm514_vm0, %v1474_v28 }
  0x55   : > { %627 = vmatmul.mubr.bf16.gmra.mxu0 %v1476_v29  ;;  %691 = vmatmul.mubr.bf16.gmra.mxu1 %v1477_v30 }
  0x56   : > { %1185 = vmatprep.mubr.msk.bf16.mxu0 %vm514_vm0, %v1478_v31  ;;  %1193 = vmatprep.mubr.msk.bf16.mxu1 %vm514_vm0, %v1480_v32 }
  0x5d   : > { %635 = vmatmul.mubr.bf16.gmra.mxu0 %v1482_v33  ;;  %699 = vmatmul.mubr.bf16.gmra.mxu1 %v1483_v34 }
  0x5e   : > { %1186 = vmatprep.mubr.msk.bf16.mxu0 %vm514_vm0, %v1484_v35  ;;  %1194 = vmatprep.mubr.msk.bf16.mxu1 %vm514_vm0, %v1486_v36 }
  0x65   : > { %643 = vmatmul.mubr.bf16.gmra.mxu0 %v1488_v37  ;;  %707 = vmatmul.mubr.bf16.gmra.mxu1 %v1489_v38 }
  0x66   : > { %1187 = vmatprep.mubr.msk.bf16.mxu0 %vm514_vm0, %v1490_v39  ;;  %1195 = vmatprep.mubr.msk.bf16.mxu1 %vm514_vm0, %v1492_v40 }
  0x6d   : > { %651 = vmatmul.mubr.bf16.gmra.mxu0 %v1494_v41  ;;  %715 = vmatmul.mubr.bf16.gmra.mxu1 %v1495_v42 }
  0x6e   : > { %1188 = vmatprep.mubr.msk.bf16.mxu0 %vm514_vm0, %v1496_v43  ;;  %1196 = vmatprep.mubr.msk.bf16.mxu1 %vm514_vm0, %v1498_v44 }
  0x75   : > { %659 = vmatmul.mubr.bf16.gmra.mxu0 %v1500_v45  ;;  %723 = vmatmul.mubr.bf16.gmra.mxu1 %v1501_v46 }
  0xfd   : > { %v604_v48 = vpop.f32.mrf.mxu0  ;;  %v668_v49 = vpop.f32.mrf.mxu1 }
  0xfe   : > { %v738_v50 = vmul.f32 %v1752_v47, %v604_v48  ;;  %v754_v52 = vmul.f32 %v1752_v47, %v668_v49 }
  0xff   : > { %v606_v53 = vpop.f32.mrf.mxu0  ;;  %v670_v54 = vpop.f32.mrf.mxu1 }
 0x100   : > { %v777_v55 = vadd.f32 %v1758_v51, %v738_v50  ;;  %v793_v56 = vadd.f32 %v1758_v51, %v754_v52 }
 0x101   : > { %v607_v57 = vpop.f32.mrf.mxu0  ;;  %v671_v58 = vpop.f32.mrf.mxu1 }
 0x102   : > { %v739_v59 = vmul.f32 %v1752_v47, %v607_v57  ;;  %v755_v60 = vmul.f32 %v1752_v47, %v671_v58  ;;  %v809_v1 = vmax.f32 %v777_v55, 0.0  ;;  %v825_v2 = vmax.f32 %v793_v56, 0.0 }
 0x103   : > { %v609_v61 = vpop.f32.mrf.mxu0  ;;  %v673_v62 = vpop.f32.mrf.mxu1 }
 0x104   : > { %v778_v63 = vadd.f32 %v1758_v51, %v739_v59  ;;  %v794_v0 = vadd.f32 %v1758_v51, %v755_v60 }
 0x105   : > { %v612_v3 = vpop.f32.mrf.mxu0  ;;  %v676_v4 = vpop.f32.mrf.mxu1 }
 0x106   : > { %v810_v5 = vmax.f32 %v778_v63, 0.0  ;;  %v826_v6 = vmax.f32 %v794_v0, 0.0  ;;  %v740_v7 = vmul.f32 %v1752_v47, %v612_v3  ;;  %v756_v8 = vmul.f32 %v1752_v47, %v676_v4 }
 0x107   : > { %v614_v9 = vpop.f32.mrf.mxu0  ;;  %v678_v10 = vpop.f32.mrf.mxu1 }
 0x108   : > { %v1273_v11 = vpack.c.bf16 %v810_v5, %v809_v1  ;;  %v1313_v12 = vpack.c.bf16 %v826_v6, %v825_v2  ;;  %v779_v13 = vadd.f32 %v1758_v51, %v740_v7  ;;  %v795_v14 = vadd.f32 %v1758_v51, %v756_v8 }
 0x109   : > { %v615_v15 = vpop.f32.mrf.mxu0  ;;  %v679_v16 = vpop.f32.mrf.mxu1 }
 0x10a   : > { %1274 = vst [vmem:[%s1774_s26] sm:$0xff] %v1273_v11   ;;  %1357 = vst [vmem:[%s1774_s26 + $0x40] sm:$0xff] %v1313_v12   ;;  %v741_v17 = vmul.f32 %v1752_v47, %v615_v15  ;;  %v757_v18 = vmul.f32 %v1752_v47, %v679_v16  ;;  %v811_v23 = vmax.f32 %v779_v13, 0.0  ;;  %v827_v24 = vmax.f32 %v795_v14, 0.0 }
 0x10b   : > { %v617_v19 = vpop.f32.mrf.mxu0  ;;  %v681_v20 = vpop.f32.mrf.mxu1 }
 0x10c   : > { %v780_v21 = vadd.f32 %v1758_v51, %v741_v17  ;;  %v796_v22 = vadd.f32 %v1758_v51, %v757_v18 }
 0x10d   : > { %v620_v25 = vpop.f32.mrf.mxu0  ;;  %v684_v26 = vpop.f32.mrf.mxu1 }
 0x10e   : > { %v812_v27 = vmax.f32 %v780_v21, 0.0  ;;  %v828_v28 = vmax.f32 %v796_v22, 0.0  ;;  %v742_v29 = vmul.f32 %v1752_v47, %v620_v25  ;;  %v758_v30 = vmul.f32 %v1752_v47, %v684_v26 }
 0x10f   : > { %v622_v31 = vpop.f32.mrf.mxu0  ;;  %v686_v32 = vpop.f32.mrf.mxu1 }
 0x110   : > { %v1278_v33 = vpack.c.bf16 %v812_v27, %v811_v23  ;;  %v1318_v34 = vpack.c.bf16 %v828_v28, %v827_v24  ;;  %v781_v35 = vadd.f32 %v1758_v51, %v742_v29  ;;  %v797_v36 = vadd.f32 %v1758_v51, %v758_v30 }
 0x111   : > { %v623_v37 = vpop.f32.mrf.mxu0  ;;  %v687_v38 = vpop.f32.mrf.mxu1 }
 0x112   : > { %1350 = vst [vmem:[%s1774_s26 + $0x8] sm:$0xff] %v1278_v33   ;;  %1358 = vst [vmem:[%s1774_s26 + $0x48] sm:$0xff] %v1318_v34   ;;  %v743_v39 = vmul.f32 %v1752_v47, %v623_v37  ;;  %v759_v40 = vmul.f32 %v1752_v47, %v687_v38  ;;  %v813_v45 = vmax.f32 %v781_v35, 0.0  ;;  %v829_v46 = vmax.f32 %v797_v36, 0.0 }
 0x113   : > { %v625_v41 = vpop.f32.mrf.mxu0  ;;  %v689_v42 = vpop.f32.mrf.mxu1 }
 0x114   : > { %v782_v43 = vadd.f32 %v1758_v51, %v743_v39  ;;  %v798_v44 = vadd.f32 %v1758_v51, %v759_v40 }
 0x115   : > { %v628_v48 = vpop.f32.mrf.mxu0  ;;  %v692_v49 = vpop.f32.mrf.mxu1 }
 0x116   : > { %v814_v50 = vmax.f32 %v782_v43, 0.0  ;;  %v830_v52 = vmax.f32 %v798_v44, 0.0  ;;  %v744_v53 = vmul.f32 %v1752_v47, %v628_v48  ;;  %v760_v54 = vmul.f32 %v1752_v47, %v692_v49 }
 0x117   : > { %v630_v55 = vpop.f32.mrf.mxu0  ;;  %v694_v56 = vpop.f32.mrf.mxu1 }
 0x118   : > { %v1283_v57 = vpack.c.bf16 %v814_v50, %v813_v45  ;;  %v1323_v58 = vpack.c.bf16 %v830_v52, %v829_v46  ;;  %v783_v59 = vadd.f32 %v1758_v51, %v744_v53  ;;  %v799_v60 = vadd.f32 %v1758_v51, %v760_v54 }
 0x119   : > { %v631_v61 = vpop.f32.mrf.mxu0  ;;  %v695_v62 = vpop.f32.mrf.mxu1 }
 0x11a   : > { %1351 = vst [vmem:[%s1774_s26 + $0x10] sm:$0xff] %v1283_v57   ;;  %1359 = vst [vmem:[%s1774_s26 + $0x50] sm:$0xff] %v1323_v58   ;;  %v745_v63 = vmul.f32 %v1752_v47, %v631_v61  ;;  %v761_v0 = vmul.f32 %v1752_v47, %v695_v62  ;;  %v815_v5 = vmax.f32 %v783_v59, 0.0  ;;  %v831_v6 = vmax.f32 %v799_v60, 0.0 }
 0x11b   : > { %v633_v1 = vpop.f32.mrf.mxu0  ;;  %v697_v2 = vpop.f32.mrf.mxu1 }
 0x11c   : > { %v784_v3 = vadd.f32 %v1758_v51, %v745_v63  ;;  %v800_v4 = vadd.f32 %v1758_v51, %v761_v0 }
 0x11d   : > { %v636_v7 = vpop.f32.mrf.mxu0  ;;  %v700_v8 = vpop.f32.mrf.mxu1 }
 0x11e   : > { %v816_v9 = vmax.f32 %v784_v3, 0.0  ;;  %v832_v10 = vmax.f32 %v800_v4, 0.0  ;;  %v746_v11 = vmul.f32 %v1752_v47, %v636_v7  ;;  %v762_v12 = vmul.f32 %v1752_v47, %v700_v8 }
 0x11f   : > { %v638_v13 = vpop.f32.mrf.mxu0  ;;  %v702_v14 = vpop.f32.mrf.mxu1 }
 0x120   : > { %v1288_v15 = vpack.c.bf16 %v816_v9, %v815_v5  ;;  %v1328_v16 = vpack.c.bf16 %v832_v10, %v831_v6  ;;  %v785_v17 = vadd.f32 %v1758_v51, %v746_v11  ;;  %v801_v18 = vadd.f32 %v1758_v51, %v762_v12 }
 0x121   : > { %v639_v19 = vpop.f32.mrf.mxu0  ;;  %v703_v20 = vpop.f32.mrf.mxu1 }
 0x122   : > { %1352 = vst [vmem:[%s1774_s26 + $0x18] sm:$0xff] %v1288_v15   ;;  %1360 = vst [vmem:[%s1774_s26 + $0x58] sm:$0xff] %v1328_v16   ;;  %v747_v21 = vmul.f32 %v1752_v47, %v639_v19  ;;  %v763_v22 = vmul.f32 %v1752_v47, %v703_v20  ;;  %v817_v27 = vmax.f32 %v785_v17, 0.0  ;;  %v833_v28 = vmax.f32 %v801_v18, 0.0 }
 0x123   : > { %v641_v23 = vpop.f32.mrf.mxu0  ;;  %v705_v24 = vpop.f32.mrf.mxu1 }
 0x124   : > { %v786_v25 = vadd.f32 %v1758_v51, %v747_v21  ;;  %v802_v26 = vadd.f32 %v1758_v51, %v763_v22 }
 0x125   : > { %v644_v29 = vpop.f32.mrf.mxu0  ;;  %v708_v30 = vpop.f32.mrf.mxu1 }
 0x126   : > { %v818_v31 = vmax.f32 %v786_v25, 0.0  ;;  %v834_v32 = vmax.f32 %v802_v26, 0.0  ;;  %v748_v33 = vmul.f32 %v1752_v47, %v644_v29  ;;  %v764_v34 = vmul.f32 %v1752_v47, %v708_v30 }
 0x127   : > { %v646_v35 = vpop.f32.mrf.mxu0  ;;  %v710_v36 = vpop.f32.mrf.mxu1 }
 0x128   : > { %v1293_v37 = vpack.c.bf16 %v818_v31, %v817_v27  ;;  %v1333_v38 = vpack.c.bf16 %v834_v32, %v833_v28  ;;  %v787_v39 = vadd.f32 %v1758_v51, %v748_v33  ;;  %v803_v40 = vadd.f32 %v1758_v51, %v764_v34 }
 0x129   : > { %v647_v41 = vpop.f32.mrf.mxu0  ;;  %v711_v42 = vpop.f32.mrf.mxu1 }
 0x12a   : > { %1353 = vst [vmem:[%s1774_s26 + $0x20] sm:$0xff] %v1293_v37   ;;  %1361 = vst [vmem:[%s1774_s26 + $0x60] sm:$0xff] %v1333_v38   ;;  %v749_v43 = vmul.f32 %v1752_v47, %v647_v41  ;;  %v765_v44 = vmul.f32 %v1752_v47, %v711_v42  ;;  %v819_v50 = vmax.f32 %v787_v39, 0.0  ;;  %v835_v52 = vmax.f32 %v803_v40, 0.0 }
 0x12b   : > { %v649_v45 = vpop.f32.mrf.mxu0  ;;  %v713_v46 = vpop.f32.mrf.mxu1 }
 0x12c   : > { %v788_v48 = vadd.f32 %v1758_v51, %v749_v43  ;;  %v804_v49 = vadd.f32 %v1758_v51, %v765_v44 }
 0x12d   : > { %v652_v53 = vpop.f32.mrf.mxu0  ;;  %v716_v54 = vpop.f32.mrf.mxu1 }
 0x12e   : > { %v820_v55 = vmax.f32 %v788_v48, 0.0  ;;  %v836_v56 = vmax.f32 %v804_v49, 0.0  ;;  %v750_v57 = vmul.f32 %v1752_v47, %v652_v53  ;;  %v766_v58 = vmul.f32 %v1752_v47, %v716_v54 }
 0x12f   : > { %v654_v59 = vpop.f32.mrf.mxu0  ;;  %v718_v60 = vpop.f32.mrf.mxu1 }
 0x130   : > { %v1298_v61 = vpack.c.bf16 %v820_v55, %v819_v50  ;;  %v1338_v62 = vpack.c.bf16 %v836_v56, %v835_v52  ;;  %v789_v63 = vadd.f32 %v1758_v51, %v750_v57  ;;  %v805_v0 = vadd.f32 %v1758_v51, %v766_v58 }
 0x131   : > { %v655_v1 = vpop.f32.mrf.mxu0  ;;  %v719_v2 = vpop.f32.mrf.mxu1 }
 0x132   : > { %1354 = vst [vmem:[%s1774_s26 + $0x28] sm:$0xff] %v1298_v61   ;;  %1362 = vst [vmem:[%s1774_s26 + $0x68] sm:$0xff] %v1338_v62   ;;  %v751_v3 = vmul.f32 %v1752_v47, %v655_v1  ;;  %v767_v4 = vmul.f32 %v1752_v47, %v719_v2  ;;  %v821_v9 = vmax.f32 %v789_v63, 0.0  ;;  %v837_v10 = vmax.f32 %v805_v0, 0.0 }
 0x133   : > { %v657_v5 = vpop.f32.mrf.mxu0  ;;  %v721_v6 = vpop.f32.mrf.mxu1 }
 0x134   : > { %v790_v7 = vadd.f32 %v1758_v51, %v751_v3  ;;  %v806_v8 = vadd.f32 %v1758_v51, %v767_v4 }
 0x135   : > { %v660_v11 = vpop.f32.mrf.mxu0  ;;  %v724_v12 = vpop.f32.mrf.mxu1 }
 0x136   : > { %v822_v13 = vmax.f32 %v790_v7, 0.0  ;;  %v838_v14 = vmax.f32 %v806_v8, 0.0  ;;  %v752_v15 = vmul.f32 %v1752_v47, %v660_v11  ;;  %v768_v16 = vmul.f32 %v1752_v47, %v724_v12 }
 0x137   : > { %v662_v17 = vpop.f32.mrf.mxu0  ;;  %v726_v18 = vpop.f32.mrf.mxu1 }
 0x138   : > { %v1303_v19 = vpack.c.bf16 %v822_v13, %v821_v9  ;;  %v1343_v20 = vpack.c.bf16 %v838_v14, %v837_v10  ;;  %v791_v23 = vadd.f32 %v1758_v51, %v752_v15  ;;  %v807_v24 = vadd.f32 %v1758_v51, %v768_v16 }
 0x139   : > { %v663_v21 = vpop.f32.mrf.mxu0  ;;  %v727_v22 = vpop.f32.mrf.mxu1 }
 0x13a   : > { %1355 = vst [vmem:[%s1774_s26 + $0x30] sm:$0xff] %v1303_v19   ;;  %1363 = vst [vmem:[%s1774_s26 + $0x70] sm:$0xff] %v1343_v20   ;;  %v753_v25 = vmul.f32 %v1752_v47, %v663_v21  ;;  %v769_v26 = vmul.f32 %v1752_v47, %v727_v22  ;;  %v823_v31 = vmax.f32 %v791_v23, 0.0  ;;  %v839_v32 = vmax.f32 %v807_v24, 0.0 }
 0x13b   : > { %v665_v27 = vpop.f32.mrf.mxu0  ;;  %v729_v28 = vpop.f32.mrf.mxu1 }
 0x13c   : > { %v792_v29 = vadd.f32 %v1758_v51, %v753_v25  ;;  %v808_v30 = vadd.f32 %v1758_v51, %v769_v26 }
 0x13e   : > { %v824_v33 = vmax.f32 %v792_v29, 0.0  ;;  %v840_v34 = vmax.f32 %v808_v30, 0.0 }
 0x140   : > { %v1308_v47 = vpack.c.bf16 %v824_v33, %v823_v31  ;;  %v1348_v35 = vpack.c.bf16 %v840_v34, %v839_v32 }
 0x142   : > { %1356 = vst [vmem:[%s1774_s26 + $0x38] sm:$0xff] %v1308_v47   ;;  %1364 = vst [vmem:[%s1774_s26 + $0x78] sm:$0xff] %v1348_v35  }
 0x143   : > { %1515 = shalt.err (!%p1512_p5)
}
 0x144   : > { %s1516_s12 = scalar_lea.hbm %s1847_s7, 2048  ;;  %s1520_s22 = scalar_lea.hbm %s1904_s4, 4096 }
 0x145   : > { %p1517_p6 = scmp.ne.s32.totalorder %s1847_s7, %s1516_s12  ;;  %p1521_p10 = scmp.lt.s32.totalorder %s1847_s7, %s1904_s4 }
 0x146   : > { %p1522_p11 = scmp.lt.s32.totalorder %s1520_s22, %s1516_s12 }
 0x147   : > { %p1518_p7 = pnand %p1517_p6, %p1650_p4 }
 0x148   : > { %p1523_p12 = por %p1522_p11, %p1521_p10 }
 0x149   : > { %p1519_p9 = pneg %p1518_p7 }
 0x14b   : > { %p1524_p13 = pnand %p1523_p12, %p1519_p9 }
 0x14d   : > { %1527 = shalt.err (!%p1524_p13)
}
 0x14e   : > { %s1583_s26 = smov 64   ;;  %s1584_s29 = smov 4  }
 0x14f   : > { %1385 = dma.vmem_to_hbm [thread:$0]  (%p1650_p4), %s1849_s30, 2048, %s1847_s7, %s1855_s18, %s1583_s26, %s1583_s26, %s1584_s29  }
 0x150 PF: > { %p1391_p0 = scmp.ge.s32.totalorder %s1578_s20, 2  ;;  %s1031_s5 = sand.u32 1, %s1558_s15  }
 0x151   : > { %s1032_s6 = scalar_lea.sflag [#allocation3], %s1031_s5 }
 0x152   : > { %p1388_p1 = pnand %p1391_p0, %p1657_p8 }
 0x154   : > { %p1389_p2 = pneg %p1388_p1 }
 0x156   : > { %1553 = dma.done.wait (%p1389_p2), %s1032_s6, 2048  }
 0x157   : > { %1555 = vsyncadd (%p1389_p2), %s1032_s6, 4294965248  ;;  %s17_s20 = sadd.s32 1, %s1578_s20   ;;  %s1907_s15 = smov %s1562_s16 }
 0x158   : > { %p14_p3 = scmp.ge.s32.totalorder %s17_s20, 4   ;;  %s1908_s16 = smov %s1566_s17 }
 0x159   : > { %s1909_s17 = smov %s1663_s28  ;;  %s1910_s18 = smov %s1574_s19 }
 0x15a   : > { %s1911_s19 = smov %s1913_s23  ;;  %16 = sbr.rel (!%p14_p3) target bundleno = 4 (0x4), region = 80 }
 0x15f   :  { %1037 = vsyncpa [#allocation3], 1 }
 0x160   :  { %1039 = vsyncpa [#allocation3 + $0x1], 1 }

</bundles_post_ra>
